<compile_context>
chip_gen: v7x
topology: tpu7x:2x2x1
jax: 0.10.0
libtpu: 0.0.40
codegen_flags: <defaults>
</compile_context>

<pallas_src>
import functools

import jax
import jax.numpy as jnp
from jax.experimental import pallas as pl
from jax.experimental.pallas import tpu as pltpu


def deepset_kernel(x_ref, w1_ref, b1_ref, w2_ref, b2_ref,
                   w3_ref, b3_ref, w4_ref, b4_ref, out_ref, *, extra_num):
    """One batch tile of the DeepSet forward.

    x_ref:   (block_B * N, D_in)  flattened set elements for this batch tile
    out_ref: (block_B, F)         rho(sum_n phi(x_n)) for this batch tile
    Weight / bias refs are whole-array and VMEM-resident across grid steps.
    """
    block_b = out_ref.shape[0]
    n = extra_num

    x = x_ref[...]                                              # (block_B*N, D)

    # phi layer 1 + ReLU as one large-M 2D matmul on the MXU (bf16 inputs take
    # the native bf16 MXU path; accumulation is always f32).
    h = jnp.dot(x, w1_ref[...], preferred_element_type=jnp.float32) + b1_ref[...]
    h = jnp.maximum(h, 0.0)                                     # (block_B*N, H)

    # Permutation-invariant aggregation, hoisted before the (linear) second
    # phi layer:  sum_n(relu(.)@w2 + b2) == (sum_n relu(.))@w2 + N*b2.
    # With N a multiple of 8 (or block_B*N == full extent) the reshape is
    # layout preserving and the reduction lands on the XLU.
    # TODO(synk): for N not a multiple of 8, replace with an explicit
    # sublane-aligned accumulation to avoid a per-step relayout copy.
    h_sum = h.reshape(block_b, n, h.shape[-1]).sum(axis=1)      # (block_B, H)

    s = (jnp.dot(h_sum, w2_ref[...], preferred_element_type=jnp.float32)
         + float(n) * b2_ref[...])                              # (block_B, F)

    # rho network: Linear -> ReLU -> Linear (kept in f32).
    r = jnp.dot(s, w3_ref[...], preferred_element_type=jnp.float32) + b3_ref[...]
    r = jnp.maximum(r, 0.0)                                     # (block_B, H)
    out = jnp.dot(r, w4_ref[...], preferred_element_type=jnp.float32) + b4_ref[...]

    out_ref[...] = out.astype(out_ref.dtype)                    # single store


def _target_x_tile_bytes():
    """MiB-scale x-tile target derived from physical VMEM (v7x-safe fallback)."""
    try:
        vmem = pltpu.get_tpu_info().vmem_capacity_bytes
    except Exception:
        vmem = 64 << 20                      # assume the smallest (v7x) budget
    # ~1/16 of physical VMEM for the streamed x tile leaves room for the
    # double buffer, the (rows, H) f32 intermediate and the weight buffers:
    # 4 MiB on v7x, 8 MiB on v5e/v6e.
    return int(max(2 << 20, min(8 << 20, vmem // 16)))


def _choose_block_b(batch, n, d, x_itemsize, *, target_bytes=None):
    """Batch-tile size: MiB-scale x tiles; >= 2 grid steps for large batches
    (v7x dual-TC sharding); block_b a multiple of 8 once it exceeds 8."""
    if target_bytes is None:
        target_bytes = _target_x_tile_bytes()
    bytes_per_batch_elem = max(1, n * d * x_itemsize)
    block_b = max(1, min(batch, target_bytes // bytes_per_batch_elem))
    if batch >= 16:
        # Guarantee >= 2 grid steps so "parallel" can shard across both
        # TensorCores on v7x (no tile shrink for tiny batches).
        block_b = min(block_b, pl.cdiv(batch, 2))
    if block_b >= 8:
        block_b = (block_b // 8) * 8         # sublane-aligned rows for any N
    return int(max(block_b, 1))


def _vmem_limit_bytes(block_rows, block_b, d, hdim, f):
    """Scoped-VMEM request: double-buffered pipeline operands plus the live
    in-kernel intermediates; clamped to stay inside v7x's 64 MiB physical."""
    it = 4
    x_tile = block_rows * d * it
    h_tile = block_rows * hdim * it
    out_tile = block_b * f * it
    w_bytes = (d * hdim + hdim + hdim * f + f
               + f * hdim + hdim + hdim * f + f) * it
    budget = 2 * (x_tile + out_tile + w_bytes) + x_tile + 2 * h_tile
    return int(min(max(budget + (8 << 20), 32 << 20), 48 << 20))


def deepset_forward(x, x_static, params, *, extra_num, input_size, static_size,
                    block_b=None, use_bf16_inputs=False):
    """Wrapper: view-reshapes (PyTorch semantics), batch padding to a grid
    multiple, and a batch-gridded pallas_call."""
    x = x.reshape(-1, extra_num * input_size)
    x_static = x_static.reshape(-1, static_size)
    B = x.shape[0]
    N, D = extra_num, input_size
    H = params['w1'].shape[1]
    F = params['w2'].shape[1]

    x_flat = x.reshape(B * N, D)
    w1 = params['w1']
    if use_bf16_inputs:
        # Halve the dominant HBM stream (x); accumulation stays f32 in-kernel.
        x_flat = x_flat.astype(jnp.bfloat16)
        w1 = w1.astype(jnp.bfloat16)

    if block_b is None:
        block_b = _choose_block_b(B, N, D, x_flat.dtype.itemsize)
    block_b = int(min(block_b, B))
    grid_len = int(pl.cdiv(B, block_b))
    B_pad = grid_len * block_b

    if B_pad != B:
        # Zero-pad whole batch elements; they are sliced off below and never
        # mix with real ones (the set-sum is per batch element).
        pad_rows = (B_pad - B) * N
        x_flat = jnp.concatenate(
            [x_flat, jnp.zeros((pad_rows, D), x_flat.dtype)], axis=0)

    block_rows = block_b * N

    const = lambda i: (0, 0)
    in_specs = [
        pl.BlockSpec((block_rows, D), lambda i: (i, 0)),            # x tile
        pl.BlockSpec((D, H), const), pl.BlockSpec((1, H), const),   # w1, b1
        pl.BlockSpec((H, F), const), pl.BlockSpec((1, F), const),   # w2, b2
        pl.BlockSpec((F, H), const), pl.BlockSpec((1, H), const),   # w3, b3
        pl.BlockSpec((H, F), const), pl.BlockSpec((1, F), const),   # w4, b4
    ]
    out_spec = pl.BlockSpec((block_b, F), lambda i: (i, 0))

    # FLOPs after the sum-before-w2 rewrite; bytes = x + weights + rho output.
    flops = B_pad * (2 * N * D * H + 2 * H * F + 2 * F * H + 2 * H * F)
    bytes_accessed = (x_flat.dtype.itemsize * B_pad * N * D
                      + 4 * (B_pad * F + D * H + H + H * F + F
                             + F * H + H + H * F + F))
    cost = pl.CostEstimate(flops=flops, transcendentals=0,
                           bytes_accessed=bytes_accessed)

    kernel = functools.partial(deepset_kernel, extra_num=N)
    rho_out = pl.pallas_call(
        kernel,
        out_shape=jax.ShapeDtypeStruct((B_pad, F), jnp.float32),
        grid_spec=pltpu.PrefetchScalarGridSpec(
            num_scalar_prefetch=0,
            grid=(grid_len,),
            in_specs=in_specs,
            out_specs=out_spec),
        compiler_params=pltpu.CompilerParams(
            dimension_semantics=("parallel",),
            vmem_limit_bytes=_vmem_limit_bytes(block_rows, block_b, D, H, F)),
        cost_estimate=cost,
    )(x_flat, w1, params['b1'], params['w2'], params['b2'],
      params['w3'], params['b3'], params['w4'], params['b4'])

    rho_out = rho_out[:B]
    # x_static is a pure passthrough: concat in plain JAX instead of shipping
    # it through VMEM and paying an extra masked partial-lane store.
    return jnp.concatenate([rho_out, x_static], axis=1)


def init_params(key, input_size, feature_size, hidden_size):
    """Deterministic synthetic parameters (Linear weights stored as (in, out))."""
    ks = jax.random.split(key, 8)

    def lin(kw, kb, fan_in, fan_out):
        bound = 1.0 / jnp.sqrt(fan_in)
        w = jax.random.uniform(kw, (fan_in, fan_out), jnp.float32, -bound, bound)
        b = jax.random.uniform(kb, (1, fan_out), jnp.float32, -bound, bound)
        return w, b

    w1, b1 = lin(ks[0], ks[1], input_size, hidden_size)    # phi layer 1
    w2, b2 = lin(ks[2], ks[3], hidden_size, feature_size)  # phi layer 2
    w3, b3 = lin(ks[4], ks[5], feature_size, hidden_size)  # rho layer 1
    w4, b4 = lin(ks[6], ks[7], hidden_size, feature_size)  # rho layer 2
    return dict(w1=w1, b1=b1, w2=w2, b2=b2, w3=w3, b3=b3, w4=w4, b4=b4)


def deepset_reference(x, x_static, params, *, extra_num, input_size, static_size):
    """Pure-JAX reference mirroring the PyTorch forward exactly."""
    x = x.reshape(-1, extra_num, input_size)
    x_static = x_static.reshape(-1, static_size)
    h = jnp.maximum(x @ params['w1'] + params['b1'][None], 0.0)
    phi = h @ params['w2'] + params['b2'][None]
    s = jnp.sum(phi, axis=1)
    r = jnp.maximum(s @ params['w3'] + params['b3'], 0.0)
    out = r @ params['w4'] + params['b4']
    return jnp.concatenate([out, x_static], axis=1)


if __name__ == "__main__":
    extra_num = 8
    input_size = 16
    feature_size = 16
    hidden_size = 32
    static_size = 8

    key = jax.random.PRNGKey(0)
    kx, ks, kp, kx2, ks2 = jax.random.split(key, 5)
    params = init_params(kp, input_size, feature_size, hidden_size)

    # Small case (inputs arrive flattened; the module .view()s them back).
    B = 2
    x = jax.random.normal(kx, (B, extra_num * input_size), jnp.float32)
    x_static = jax.random.normal(ks, (B, static_size), jnp.float32)
    out = jax.block_until_ready(
        deepset_forward(x, x_static, params, extra_num=extra_num,
                        input_size=input_size, static_size=static_size))
    ref = deepset_reference(x, x_static, params, extra_num=extra_num,
                            input_size=input_size, static_size=static_size)
    assert out.shape == (B, feature_size + static_size)
    assert jnp.allclose(out, ref, atol=1e-4, rtol=1e-4)

    # Non-divisible batch: exercises pl.cdiv grid, zero padding, block_b
    # rounded to a multiple of 8, and a multi-step pipelined grid.
    B2 = 50
    x2 = jax.random.normal(kx2, (B2, extra_num * input_size), jnp.float32)
    x_static2 = jax.random.normal(ks2, (B2, static_size), jnp.float32)
    out2 = jax.block_until_ready(
        deepset_forward(x2, x_static2, params, extra_num=extra_num,
                        input_size=input_size, static_size=static_size))
    ref2 = deepset_reference(x2, x_static2, params, extra_num=extra_num,
                             input_size=input_size, static_size=static_size)
    assert out2.shape == (B2, feature_size + static_size)
    assert jnp.allclose(out2, ref2, atol=1e-4, rtol=1e-4)

    # bf16-input variant (halves the dominant HBM x stream); accuracy tradeoff,
    # so only a loose absolute-error check.
    out_bf16 = jax.block_until_ready(
        deepset_forward(x2, x_static2, params, extra_num=extra_num,
                        input_size=input_size, static_size=static_size,
                        use_bf16_inputs=True))
    assert out_bf16.shape == out2.shape
    assert float(jnp.max(jnp.abs(out_bf16 - ref2))) < 0.5

    print("KERNEL_OK")
</pallas_src>

<mosaic_0001>
module attributes {stable_mosaic.version = 11 : i64} {
  func.func @deepset_kernel(%arg0: i32, %arg1: memref<16x16xf32, #tpu.memory_space<vmem>>, %arg2: memref<16x32xf32, #tpu.memory_space<vmem>>, %arg3: memref<1x32xf32, #tpu.memory_space<vmem>>, %arg4: memref<32x16xf32, #tpu.memory_space<vmem>>, %arg5: memref<1x16xf32, #tpu.memory_space<vmem>>, %arg6: memref<16x32xf32, #tpu.memory_space<vmem>>, %arg7: memref<1x32xf32, #tpu.memory_space<vmem>>, %arg8: memref<32x16xf32, #tpu.memory_space<vmem>>, %arg9: memref<1x16xf32, #tpu.memory_space<vmem>>, %arg10: memref<2x16xf32, #tpu.memory_space<vmem>>) attributes {dimension_semantics = [#tpu.dimension_semantics<parallel>], iteration_bounds = array<i64: 1>, scalar_prefetch = 0 : i64, scratch_operands = 0 : i64, tpu.core_type = #tpu.core_type<tc>, window_params = [{transform_indices = @transform_0, window_bounds = array<i64: 16, 16>}, {pipeline_mode = #tpu.pipeline_mode<synchronous>, transform_indices = @transform_1, window_bounds = array<i64: 16, 32>}, {pipeline_mode = #tpu.pipeline_mode<synchronous>, transform_indices = @transform_2, window_bounds = array<i64: 1, 32>}, {pipeline_mode = #tpu.pipeline_mode<synchronous>, transform_indices = @transform_3, window_bounds = array<i64: 32, 16>}, {pipeline_mode = #tpu.pipeline_mode<synchronous>, transform_indices = @transform_4, window_bounds = array<i64: 1, 16>}, {pipeline_mode = #tpu.pipeline_mode<synchronous>, transform_indices = @transform_5, window_bounds = array<i64: 16, 32>}, {pipeline_mode = #tpu.pipeline_mode<synchronous>, transform_indices = @transform_6, window_bounds = array<i64: 1, 32>}, {pipeline_mode = #tpu.pipeline_mode<synchronous>, transform_indices = @transform_7, window_bounds = array<i64: 32, 16>}, {pipeline_mode = #tpu.pipeline_mode<synchronous>, transform_indices = @transform_8, window_bounds = array<i64: 1, 16>}, {transform_indices = @transform_9, window_bounds = array<i64: 2, 16>}]} {
    %c0 = arith.constant 0 : index
    %c0_0 = arith.constant 0 : index
    %0 = vector.load %arg1[%c0, %c0_0] : memref<16x16xf32, #tpu.memory_space<vmem>>, vector<16x16xf32>
    %c0_1 = arith.constant 0 : index
    %c0_2 = arith.constant 0 : index
    %1 = vector.load %arg2[%c0_1, %c0_2] : memref<16x32xf32, #tpu.memory_space<vmem>>, vector<16x32xf32>
    %cst = arith.constant dense<0.000000e+00> : vector<16x32xf32>
    %2 = tpu.matmul %0, %1, %cst {dimension_numbers = #tpu.dot_dimension_numbers<[1], [0], [0], [1], [0, 0, 1, 1], [], []>} : vector<16x16xf32>, vector<16x32xf32>, vector<16x32xf32> -> vector<16x32xf32>
    %c0_3 = arith.constant 0 : index
    %c0_4 = arith.constant 0 : index
    %3 = vector.load %arg3[%c0_3, %c0_4] : memref<1x32xf32, #tpu.memory_space<vmem>>, vector<1x32xf32>
    %4 = vector.broadcast %3 : vector<1x32xf32> to vector<16x32xf32>
    %5 = arith.addf %2, %4 : vector<16x32xf32>
    %cst_5 = arith.constant 0.000000e+00 : f32
    %6 = vector.broadcast %cst_5 : f32 to vector<16x32xf32>
    %7 = arith.maximumf %5, %6 : vector<16x32xf32>
    %8 = vector.shape_cast %7 : vector<16x32xf32> to vector<2x8x32xf32>
    %cst_6 = arith.constant dense<0.000000e+00> : vector<2x32xf32>
    %9 = vector.multi_reduction <add>, %8, %cst_6 [1] : vector<2x8x32xf32> to vector<2x32xf32>
    %c0_7 = arith.constant 0 : index
    %c0_8 = arith.constant 0 : index
    %10 = vector.load %arg4[%c0_7, %c0_8] : memref<32x16xf32, #tpu.memory_space<vmem>>, vector<32x16xf32>
    %cst_9 = arith.constant dense<0.000000e+00> : vector<2x16xf32>
    %11 = tpu.matmul %9, %10, %cst_9 {dimension_numbers = #tpu.dot_dimension_numbers<[1], [0], [0], [1], [0, 0, 1, 1], [], []>} : vector<2x32xf32>, vector<32x16xf32>, vector<2x16xf32> -> vector<2x16xf32>
    %c0_10 = arith.constant 0 : index
    %c0_11 = arith.constant 0 : index
    %12 = vector.load %arg5[%c0_10, %c0_11] : memref<1x16xf32, #tpu.memory_space<vmem>>, vector<1x16xf32>
    %cst_12 = arith.constant 8.000000e+00 : f32
    %13 = vector.broadcast %cst_12 : f32 to vector<1x16xf32>
    %14 = arith.mulf %13, %12 : vector<1x16xf32>
    %15 = vector.broadcast %14 : vector<1x16xf32> to vector<2x16xf32>
    %16 = arith.addf %11, %15 : vector<2x16xf32>
    %c0_13 = arith.constant 0 : index
    %c0_14 = arith.constant 0 : index
    %17 = vector.load %arg6[%c0_13, %c0_14] : memref<16x32xf32, #tpu.memory_space<vmem>>, vector<16x32xf32>
    %cst_15 = arith.constant dense<0.000000e+00> : vector<2x32xf32>
    %18 = tpu.matmul %16, %17, %cst_15 {dimension_numbers = #tpu.dot_dimension_numbers<[1], [0], [0], [1], [0, 0, 1, 1], [], []>} : vector<2x16xf32>, vector<16x32xf32>, vector<2x32xf32> -> vector<2x32xf32>
    %c0_16 = arith.constant 0 : index
    %c0_17 = arith.constant 0 : index
    %19 = vector.load %arg7[%c0_16, %c0_17] : memref<1x32xf32, #tpu.memory_space<vmem>>, vector<1x32xf32>
    %20 = vector.broadcast %19 : vector<1x32xf32> to vector<2x32xf32>
    %21 = arith.addf %18, %20 : vector<2x32xf32>
    %cst_18 = arith.constant 0.000000e+00 : f32
    %22 = vector.broadcast %cst_18 : f32 to vector<2x32xf32>
    %23 = arith.maximumf %21, %22 : vector<2x32xf32>
    %c0_19 = arith.constant 0 : index
    %c0_20 = arith.constant 0 : index
    %24 = vector.load %arg8[%c0_19, %c0_20] : memref<32x16xf32, #tpu.memory_space<vmem>>, vector<32x16xf32>
    %cst_21 = arith.constant dense<0.000000e+00> : vector<2x16xf32>
    %25 = tpu.matmul %23, %24, %cst_21 {dimension_numbers = #tpu.dot_dimension_numbers<[1], [0], [0], [1], [0, 0, 1, 1], [], []>} : vector<2x32xf32>, vector<32x16xf32>, vector<2x16xf32> -> vector<2x16xf32>
    %c0_22 = arith.constant 0 : index
    %c0_23 = arith.constant 0 : index
    %26 = vector.load %arg9[%c0_22, %c0_23] : memref<1x16xf32, #tpu.memory_space<vmem>>, vector<1x16xf32>
    %27 = vector.broadcast %26 : vector<1x16xf32> to vector<2x16xf32>
    %28 = arith.addf %25, %27 : vector<2x16xf32>
    %c0_24 = arith.constant 0 : index
    %c0_25 = arith.constant 0 : index
    %29 = vector.load %arg10[%c0_24, %c0_25] : memref<2x16xf32, #tpu.memory_space<vmem>>, vector<2x16xf32>
    tpu.vector_store %arg10[%c0_24, %c0_25], %28 {strides = array<i32>} : memref<2x16xf32, #tpu.memory_space<vmem>>, vector<2x16xf32>,
    return
  }
  func.func @transform_0(%arg0: i32) -> (i32, i32) {
    %c0_i32 = arith.constant 0 : i32
    %c0_i32_0 = arith.constant 0 : i32
    return %arg0, %c0_i32 : i32, i32
  }
  func.func @transform_1(%arg0: i32) -> (i32, i32) {
    %c0_i32 = arith.constant 0 : i32
    %c0_i32_0 = arith.constant 0 : i32
    %c0_i32_1 = arith.constant 0 : i32
    return %c0_i32, %c0_i32_0 : i32, i32
  }
  func.func @transform_2(%arg0: i32) -> (i32, i32) {
    %c0_i32 = arith.constant 0 : i32
    %c0_i32_0 = arith.constant 0 : i32
    %c0_i32_1 = arith.constant 0 : i32
    return %c0_i32, %c0_i32_0 : i32, i32
  }
  func.func @transform_3(%arg0: i32) -> (i32, i32) {
    %c0_i32 = arith.constant 0 : i32
    %c0_i32_0 = arith.constant 0 : i32
    %c0_i32_1 = arith.constant 0 : i32
    return %c0_i32, %c0_i32_0 : i32, i32
  }
  func.func @transform_4(%arg0: i32) -> (i32, i32) {
    %c0_i32 = arith.constant 0 : i32
    %c0_i32_0 = arith.constant 0 : i32
    %c0_i32_1 = arith.constant 0 : i32
    return %c0_i32, %c0_i32_0 : i32, i32
  }
  func.func @transform_5(%arg0: i32) -> (i32, i32) {
    %c0_i32 = arith.constant 0 : i32
    %c0_i32_0 = arith.constant 0 : i32
    %c0_i32_1 = arith.constant 0 : i32
    return %c0_i32, %c0_i32_0 : i32, i32
  }
  func.func @transform_6(%arg0: i32) -> (i32, i32) {
    %c0_i32 = arith.constant 0 : i32
    %c0_i32_0 = arith.constant 0 : i32
    %c0_i32_1 = arith.constant 0 : i32
    return %c0_i32, %c0_i32_0 : i32, i32
  }
  func.func @transform_7(%arg0: i32) -> (i32, i32) {
    %c0_i32 = arith.constant 0 : i32
    %c0_i32_0 = arith.constant 0 : i32
    %c0_i32_1 = arith.constant 0 : i32
    return %c0_i32, %c0_i32_0 : i32, i32
  }
  func.func @transform_8(%arg0: i32) -> (i32, i32) {
    %c0_i32 = arith.constant 0 : i32
    %c0_i32_0 = arith.constant 0 : i32
    %c0_i32_1 = arith.constant 0 : i32
    return %c0_i32, %c0_i32_0 : i32, i32
  }
  func.func @transform_9(%arg0: i32) -> (i32, i32) {
    %c0_i32 = arith.constant 0 : i32
    %c0_i32_0 = arith.constant 0 : i32
    return %arg0, %c0_i32 : i32, i32
  }
}

</mosaic_0001>

<bundles_post_ra>
// kernel: tpu_custom_call.1
= control target key start
LH: loop header
LB: loop body
LE: loop exit
PB: predicated region body
PF: predicated region fallthrough
CT: control target
= control target key end

     0   :  { %vm44_vm0 = vcmask 130048   ;;  %s652_s0 = inlined_call_operand.vmem [shape: f32[16,16], index: 0, kind: input, shape index: {}]   ;;  %s653_s1 = inlined_call_operand.vmem [shape: f32[16,32], index: 1, kind: input, shape index: {}]   ;;  %s654_s2 = inlined_call_operand.vmem [shape: f32[1,32], index: 2, kind: input, shape index: {}]   ;;  %s655_s3 = inlined_call_operand.vmem [shape: f32[32,16], index: 3, kind: input, shape index: {}]   ;;  %s656_s4 = inlined_call_operand.vmem [shape: f32[1,16], index: 4, kind: input, shape index: {}]   ;;  %s657_s5 = inlined_call_operand.vmem [shape: f32[16,32], index: 5, kind: input, shape index: {}]   ;;  %s658_s6 = inlined_call_operand.vmem [shape: f32[1,32], index: 6, kind: input, shape index: {}]   ;;  %s659_s7 = inlined_call_operand.vmem [shape: f32[32,16], index: 7, kind: input, shape index: {}]   ;;  %s660_s8 = inlined_call_operand.vmem [shape: f32[1,16], index: 8, kind: input, shape index: {}]   ;;  %s661_s9 = inlined_call_operand.hbm [shape: f32[2,16], index: 9, kind: output, shape index: {}]  }
   0x1   :  { %v35_v0 = vld [vmem:[%s653_s1] sm:$0xff]  ;;  %v36_v1 = vld [vmem:[%s653_s1 + $0x8] sm:$0xff] }
   0x2   :  { %v33_v2 = vld [vmem:[%s652_s0] sm:$0xff]  ;;  %v475_v3 = vpack.c.bf16 %v36_v1, %v35_v0 }
   0x3   :  { %443 = vmatprep.mubr.msk.f32.mxu1 %vm44_vm0, %v33_v2 }
   0x4   :  { %14 = vsyncpa [#allocation3], 0  ;;  %476 = vmatprep.subr.bf16.mxu1 %v475_v3  ;;  %v34_v4 = vld [vmem:[%s652_s0 + $0x8] sm:$0xff]  ;;  %v143_v5 = vld [vmem:[%s655_s3] sm:$0xff]  ;;  %v522_v8 = vmov 0.0|0.0   ;;  %vm523_vm1 = vmmov 0   ;;  %v150_v38 = vlaneseq }
   0x5   :  { %478 = vmatpush3.bf16.msra.mxu1 %v475_v3  ;;  %v144_v6 = vld [vmem:[%s655_s3 + $0x8] sm:$0xff]  ;;  %485 = vmatprep.subr.bf16.mxu0 %v522_v8  ;;  %v145_v9 = vld [vmem:[%s655_s3 + $0x10] sm:$0xff]  ;;  %v146_v10 = vld [vmem:[%s655_s3 + $0x18] sm:$0xff]  ;;  %v524_v12 = vmov 0.0   ;;  %vm128_vm2 = vcmask 261120   ;;  %vm157_vm3 = vcmask 1041409  }
   0x6   :  { %v480_v7 = vpack.c.bf16 %v144_v6, %v143_v5  ;;  %479 = vmatprep.subr.bf16.mxu1 %v522_v8  ;;  %v483_v11 = vpack.c.bf16 %v146_v10, %v145_v9  ;;  %461 = vmatprep.mubr.msk.f32.mxu0 %vm523_vm1, %v524_v12  ;;  %v414_v13 = vld [vmem:[%s654_s2] ss:$0 sm:$0xff]  ;;  %v232_v36 = vld [vmem:[%s657_s5 + $0x8] sm:$0xff]  ;;  %v151_v39 = vshrl.u32 %v150_v38, 7  ;;  %v316_v50 = vld [vmem:[%s659_s7 + $0x10] sm:$0xff]  ;;  %s525_s18 = smov [#allocation2]  }
   0x7   :  { %v231_v35 = vld [vmem:[%s657_s5] sm:$0xff]  ;;  %v315_v45 = vld [vmem:[%s659_s7 + $0x8] sm:$0xff]  ;;  %v317_v51 = vld [vmem:[%s659_s7 + $0x18] sm:$0xff]  ;;  %s406_s1 = sshll.u32 %s525_s18, 4  ;;  %vm398_vm4 = vcmask 123904   ;;  %s407_s1 = int_to_ptr.vmem [resolvable:$true] %s406_s1 }
   0x8   :  { %444 = vmatmul.mubr.msk.f32.vlgmr.msra.gmra.mrb[0].mxu1 %vm44_vm0, %v34_v4  ;;  %v486_v37 = vpack.c.bf16 %v232_v36, %v231_v35  ;;  %v147_v40 = vld [vmem:[%s656_s4] sm:$0x1]  ;;  %v152_v42 = vsub.s32 0, %v151_v39  ;;  %v492_v52 = vpack.c.bf16 %v317_v51, %v316_v50  ;;  %p503_p1 = scmp.lt.s32.totalorder %s407_s1, %s407_s1 }
   0x9   :  { %481 = vmatpush3.bf16.msra.mxu1 %v480_v7  ;;  %454 = vmatprep.mubr.msk.f32.mxu1 %vm523_vm1, %v524_v12  ;;  %v148_v41 = vmul.f32 8.0, %v147_v40  ;;  %v314_v44 = vld [vmem:[%s659_s7] sm:$0xff]  ;;  %s498_s7 = scalar_lea.vmem %s407_s1, 32 }
   0xa   :  { %482 = vmatprep.subr.bf16.mxu1 %v522_v8  ;;  %487 = vmatpush3.bf16.msra.mxu0 %v486_v37  ;;  %v489_v47 = vpack.c.bf16 %v315_v45, %v314_v44  ;;  %v418_v53 = vld [vmem:[%s658_s6] ss:$0 sm:$0xff]  ;;  %p499_p0 = scmp.ne.s32.totalorder %s407_s1, %s498_s7  ;;  %p504_p2 = scmp.lt.s32.totalorder %s498_s7, %s498_s7 }
   0xb   :  { %488 = vmatprep.subr.bf16.mxu0 %v522_v8  ;;  %v153_v43 = vrot.slane %v148_v41, %v152_v42  ;;  %v420_v58 = vld [vmem:[%s660_s8] ss:$0 sm:$0xff] }
   0xc   :  { %p505_p3 = por %p504_p2, %p503_p1 }
   0xd   :  { %484 = vmatpush3.bf16.msra.mxu1 %v483_v11 }
   0xe   :  { %p506_p4 = pnand %p505_p3, %p499_p0 }
  0xdb   :  { %v445_v14 = vpop.f32.mrb[0].mxu1 }
  0xdc   :  { %v123_v15 = vadd.f32 %v445_v14, %v414_v13  ;;  %v117_v16 = vpop.f32.mrb[1].mxu1 }
  0xdd   :  { %v118_v17 = vadd.f32 %v414_v13, %v117_v16 }
  0xde   :  { %v127_v18 = vmax.f32 %v123_v15, 0.0 }
  0xdf   :  { %v126_v19 = vmax.f32 %v118_v17, 0.0 }
  0xe0   :  { %v136_v20 = vsel %vm128_vm2, %v127_v18, 0.0 }
  0xe1   :  { %v137_v21 = vrot.slane %v136_v20, 4  ;;  %v129_v22 = vsel %vm128_vm2, %v126_v19, 0.0 }
  0xe2   :  { %v130_v23 = vrot.slane %v129_v22, 4 }
  0xe3   :  { %v138_v24 = vadd.f32 %v137_v21, %v136_v20 }
  0xe4   :  { %v131_v25 = vadd.f32 %v130_v23, %v129_v22 }
  0xe5   :  { %v139_v26 = vrot.slane %v138_v24, 2 }
  0xe6   :  { %v132_v27 = vrot.slane %v131_v25, 2 }
  0xe7   :  { %v140_v28 = vadd.f32 %v139_v26, %v138_v24 }
  0xe8   :  { %v133_v29 = vadd.f32 %v132_v27, %v131_v25 }
  0xe9   :  { %v141_v30 = vrot.slane %v140_v28, 1 }
  0xea   :  { %v134_v31 = vrot.slane %v133_v29, 1 }
  0xeb   :  { %v142_v32 = vadd.f32 %v141_v30, %v140_v28 }
  0xec   :  { %v135_v33 = vadd.f32 %v134_v31, %v133_v29 }
  0xee   :  { %v158_v34 = vsel %vm157_vm3, %v142_v32, %v135_v33 }
  0xef   :  { %455 = vmatmul.mubr.msk.f32.vlgmr.msra.gmra.mrb[2].mxu1 %vm128_vm2, %v158_v34 }
 0x1c2   :  { %v227_v46 = vpop.f32.mrb[2].mxu1 }
 0x1c3   :  { %v228_v48 = vadd.f32 %v227_v46, %v153_v43  ;;  %v456_v49 = vpop.f32.mrb[3].mxu1 }
 0x1c5   :  { %462 = vmatmul.mubr.msk.f32.vlgmr.msra.gmra.mrb[0].mxu0 %vm44_vm0, %v228_v48 }
 0x1c6   :  { %490 = vmatpush3.bf16.msra.mxu0 %v489_v47  ;;  %472 = vmatprep.mubr.msk.f32.mxu0 %vm523_vm1, %v524_v12 }
 0x1c7   :  { %491 = vmatprep.subr.bf16.mxu0 %v522_v8 }
 0x1ca   :  { %493 = vmatpush3.bf16.msra.mxu0 %v492_v52 }
 0x298   :  { %v309_v54 = vpop.f32.mrb[0].mxu0 }
 0x299   :  { %v310_v55 = vadd.f32 %v418_v53, %v309_v54  ;;  %v463_v56 = vpop.f32.mrb[1].mxu0 }
 0x29b   :  { %v313_v57 = vmax.f32 %v310_v55, 0.0 }
 0x29d   :  { %473 = vmatmul.mubr.msk.f32.vlgmr.msra.gmra.mrb[2].mxu0 %vm128_vm2, %v313_v57 }
 0x370   :  { %v394_v59 = vpop.f32.mrb[2].mxu0 }
 0x371   :  { %v395_v60 = vadd.f32 %v420_v58, %v394_v59  ;;  %v474_v61 = vpop.f32.mrb[3].mxu0 }
 0x373   :  { %399 = vst.msk [vmem:[#allocation2] sm:$0x3] %vm398_vm4, %v395_v60 }
 0x374   :  { %509 = shalt.err (!%p506_p4)
}
 0x375   :  { %s510_s20 = scalar_lea.hbm %s661_s9, 32 }
 0x376   :  { %p511_p5 = scmp.ne.s32.totalorder %s661_s9, %s510_s20  ;;  %p514_p6 = scmp.lt.u32.totalorder %s510_s20, %s661_s9 }
 0x378   :  { %p516_p7 = pnand %p514_p6, %p511_p5 }
 0x37a   :  { %519 = shalt.err (!%p516_p7)
}
 0x37b   :  { %409 = dma.vmem_to_hbm [thread:$0]  %s407_s1, 32, %s661_s9, [#allocation3]  }
 0x37c   :  { %520 = dma.done.wait [#allocation3], 32  }
 0x37d   :  { %521 = vsyncadd [#allocation3], 4294967264 }
 0x37e   :  { %413 = vsyncpa [#allocation3], 1 }

</bundles_post_ra>
